<compile_context>
chip_gen: v7x
topology: tpu7x:2x2x1
jax: 0.10.0
libtpu: 0.0.40
codegen_flags: <defaults>
</compile_context>

<pallas_src>
import functools

import numpy as np
import jax
import jax.numpy as jnp
from jax import lax
from jax.experimental import pallas as pl
from jax.experimental.pallas import tpu as pltpu


def _round_up(x, m):
    return ((x + m - 1) // m) * m


def _loss_kernel(bi_ref, bj_ref,                       # scalar-prefetch (SMEM)
                 ei_ref, ej_ref, sqi_ref, sqj_ref, labi_ref, labj_ref,
                 out_ref,
                 *, margin, eps, n_valid, tile, nb):
    k = pl.program_id(0)
    bi = bi_ref[k]
    bj = bj_ref[k]

    @pl.when(k == 0)
    def _init():
        out_ref[...] = jnp.zeros_like(out_ref)

    # Gram tile on the MXU; pairwise squared distance of pre-normalized rows.
    g = lax.dot_general(ei_ref[...], ej_ref[...], (((1,), (1,)), ((), ())),
                        preferred_element_type=jnp.float32)          # (T, T)
    d2 = jnp.maximum(sqi_ref[...] + sqj_ref[...] - 2.0 * g, 0.0)

    same = labi_ref[...] == labj_ref[...]          # (T,1)==(1,T) -> (T,T)
    dist = jnp.sqrt(d2)
    hinge = jnp.maximum(margin - (dist + eps), 0.0)
    loss_core = jnp.where(same, d2, hinge * hinge)

    # Interior off-diagonal blocks (bi < bj, not the last column block):
    # every pair is valid -> skip the iota / compare / mask chain.
    @pl.when(jnp.logical_and(bi < bj, bj < nb - 1))
    def _interior():
        out_ref[...] += jnp.sum(loss_core, axis=0, keepdims=True)

    # Diagonal blocks and the last column block: enforce i < j and exclude
    # the zero-padded / label=-1 padding columns.
    @pl.when(jnp.logical_or(bi == bj, bj == nb - 1))
    def _edge():
        row = bi * tile + lax.broadcasted_iota(jnp.int32, (tile, tile), 0)
        col = bj * tile + lax.broadcasted_iota(jnp.int32, (tile, tile), 1)
        valid = (row < col) & (col < n_valid)
        out_ref[...] += jnp.sum(jnp.where(valid, loss_core, 0.0),
                                axis=0, keepdims=True)


def online_contrastive_loss(embeddings, labels, *, margin, eps=1e-9, tile=256):
    """All-(i<j)-pairs online contrastive loss.

    Same-label pairs are positives, different-label pairs are negatives
    (deterministic all-pairs selector — the torch `pairselector` is an
    external object).  Distances of L2-normalized embeddings are computed via
    an En @ En.T Gram matmul over a triangular block grid inside the kernel.
    """
    embeddings = jnp.asarray(embeddings, jnp.float32)
    labels = jnp.asarray(labels, jnp.int32)
    n, d = embeddings.shape
    if n < 2:                      # no pairs at all -> define the loss as 0
        return jnp.float32(0.0)

    # Normalization hoisted out of the kernel (one O(N*D) pass).  Matches
    # torch F.normalize: max(sumsq, 1e-24) == max(norm, 1e-12)**2.
    ss = jnp.sum(embeddings * embeddings, axis=1, keepdims=True)
    en = embeddings * lax.rsqrt(jnp.maximum(ss, 1e-24))
    sq = jnp.sum(en * en, axis=1)                      # ~1.0 (0 for zero rows)

    d_pad = _round_up(d, 128)
    t = min(int(tile), _round_up(n, 128))              # lane-aligned row tiles
    n_pad = _round_up(n, t)
    nb = n_pad // t

    e_p = jnp.zeros((n_pad, d_pad), jnp.float32).at[:n, :d].set(en)
    sq_p = jnp.zeros((n_pad,), jnp.float32).at[:n].set(sq)
    lab_p = jnp.full((n_pad,), -1, jnp.int32).at[:n].set(labels)

    sq_row = sq_p.reshape(n_pad, 1)
    sq_col = sq_p.reshape(1, n_pad)
    lab_row = lab_p.reshape(n_pad, 1)
    lab_col = lab_p.reshape(1, n_pad)

    # Triangular block schedule: only bi <= bj; bi changes slowest so the
    # e_i row tile is reused across its whole run of column tiles.
    sched = [(i, j) for i in range(nb) for j in range(i, nb)]
    bi_arr = jnp.asarray([p[0] for p in sched], jnp.int32)
    bj_arr = jnp.asarray([p[1] for p in sched], jnp.int32)
    n_steps = len(sched)                               # nb*(nb+1)//2

    kernel = functools.partial(_loss_kernel, margin=float(margin),
                               eps=float(eps), n_valid=n, tile=t, nb=nb)

    partial_sums = pl.pallas_call(
        kernel,
        out_shape=jax.ShapeDtypeStruct((1, t), jnp.float32),
        grid_spec=pltpu.PrefetchScalarGridSpec(
            num_scalar_prefetch=2,
            grid=(n_steps,),
            in_specs=[
                pl.BlockSpec((t, d_pad), lambda k, bi, bj: (bi[k], 0)),  # rows i
                pl.BlockSpec((t, d_pad), lambda k, bi, bj: (bj[k], 0)),  # rows j
                pl.BlockSpec((t, 1),     lambda k, bi, bj: (bi[k], 0)),  # sq i
                pl.BlockSpec((1, t),     lambda k, bi, bj: (0, bj[k])),  # sq j
                pl.BlockSpec((t, 1),     lambda k, bi, bj: (bi[k], 0)),  # labels i
                pl.BlockSpec((1, t),     lambda k, bi, bj: (0, bj[k])),  # labels j
            ],
            out_specs=pl.BlockSpec((1, t), lambda k, bi, bj: (0, 0)),    # resident acc
        ),
        compiler_params=pltpu.CompilerParams(
            dimension_semantics=("arbitrary",)),
    )(bi_arr, bj_arr, e_p, e_p, sq_row, sq_col, lab_row, lab_col)

    num_pairs = n * (n - 1) // 2          # denominator is a compile-time constant
    return (jnp.sum(partial_sums) / jnp.float32(num_pairs)).astype(jnp.float32)


# ----------------------------- test helpers -----------------------------

def all_pairs_selector(labels_np):
    """Host-side explicit pair lists (for the reference check only)."""
    n = labels_np.shape[0]
    pos, neg = [], []
    for i in range(n):
        for j in range(i + 1, n):
            (pos if labels_np[i] == labels_np[j] else neg).append((i, j))
    return (np.asarray(pos, dtype=np.int32).reshape(-1, 2),
            np.asarray(neg, dtype=np.int32).reshape(-1, 2))


def reference_loss(embeddings, pos_pairs, neg_pairs, margin, eps=1e-9):
    e = jnp.asarray(embeddings, jnp.float32)
    en = e / jnp.maximum(jnp.linalg.norm(e, axis=1, keepdims=True), 1e-12)
    pos_d2 = jnp.sum((en[pos_pairs[:, 0]] - en[pos_pairs[:, 1]]) ** 2, axis=1)
    neg_d2 = jnp.sum((en[neg_pairs[:, 0]] - en[neg_pairs[:, 1]]) ** 2, axis=1)
    neg_l = jnp.maximum(margin - (jnp.sqrt(neg_d2) + eps), 0.0) ** 2
    return jnp.mean(jnp.concatenate([pos_d2, neg_l], axis=0))


if __name__ == "__main__":
    key = jax.random.PRNGKey(0)
    margin = 1.0

    # Small single-tile case (edge path only).
    N1, D1 = 16, 32
    emb1 = jax.random.normal(key, (N1, D1), dtype=jnp.float32)
    lab1 = (np.arange(N1, dtype=np.int32) % 4)
    loss1 = jax.block_until_ready(
        online_contrastive_loss(emb1, jnp.asarray(lab1), margin=margin))
    pos1, neg1 = all_pairs_selector(lab1)
    ref1 = reference_loss(emb1, pos1, neg1, margin)
    np.testing.assert_allclose(np.asarray(loss1), np.asarray(ref1),
                               rtol=1e-5, atol=1e-5)

    # Multi-tile case exercising the triangular grid, the interior fast path,
    # the diagonal blocks and the padded last column block.
    N2, D2 = 300, 32
    emb2 = jax.random.normal(jax.random.PRNGKey(1), (N2, D2), dtype=jnp.float32)
    lab2 = (np.arange(N2, dtype=np.int32) % 5)
    loss2 = jax.block_until_ready(
        online_contrastive_loss(emb2, jnp.asarray(lab2), margin=margin, tile=128))
    pos2, neg2 = all_pairs_selector(lab2)
    ref2 = reference_loss(emb2, pos2, neg2, margin)
    np.testing.assert_allclose(np.asarray(loss2), np.asarray(ref2),
                               rtol=1e-5, atol=1e-5)

    print("KERNEL_OK")
</pallas_src>

<mosaic_0001>
module attributes {stable_mosaic.version = 11 : i64} {
  func.func @_loss_kernel(%arg0: i32, %arg1: memref<1xi32, #tpu.memory_space<smem>>, %arg2: memref<1xi32, #tpu.memory_space<smem>>, %arg3: memref<128x128xf32, #tpu.memory_space<vmem>>, %arg4: memref<128x128xf32, #tpu.memory_space<vmem>>, %arg5: memref<128x1xf32, #tpu.memory_space<vmem>>, %arg6: memref<1x128xf32, #tpu.memory_space<vmem>>, %arg7: memref<128x1xi32, #tpu.memory_space<vmem>>, %arg8: memref<1x128xi32, #tpu.memory_space<vmem>>, %arg9: memref<1x128xf32, #tpu.memory_space<vmem>>) attributes {dimension_semantics = [#tpu.dimension_semantics<arbitrary>], iteration_bounds = array<i64: 1>, scalar_prefetch = 2 : i64, scratch_operands = 0 : i64, tpu.core_type = #tpu.core_type<tc>, window_params = [{transform_indices = @transform_0, window_bounds = array<i64: 128, 128>}, {transform_indices = @transform_1, window_bounds = array<i64: 128, 128>}, {transform_indices = @transform_2, window_bounds = array<i64: 128, 1>}, {transform_indices = @transform_3, window_bounds = array<i64: 1, 128>}, {transform_indices = @transform_4, window_bounds = array<i64: 128, 1>}, {transform_indices = @transform_5, window_bounds = array<i64: 1, 128>}, {pipeline_mode = #tpu.pipeline_mode<synchronous>, transform_indices = @transform_6, window_bounds = array<i64: 1, 128>}]} {
    %0 = arith.index_cast %arg0 : i32 to index
    %1 = memref.load %arg1[%0] : memref<1xi32, #tpu.memory_space<smem>>
    %2 = arith.index_cast %arg0 : i32 to index
    %3 = memref.load %arg2[%2] : memref<1xi32, #tpu.memory_space<smem>>
    %c0_i32 = arith.constant 0 : i32
    %4 = arith.cmpi eq, %arg0, %c0_i32 : i32
    %5 = arith.extui %4 : i1 to i32
    %c0_i32_0 = arith.constant 0 : i32
    %6 = arith.cmpi ne, %5, %c0_i32_0 : i32
    scf.if %6 {
      %cst_21 = arith.constant 0.000000e+00 : f32
      %44 = vector.broadcast %cst_21 : f32 to vector<1x128xf32>
      %c0_22 = arith.constant 0 : index
      %c0_23 = arith.constant 0 : index
      %45 = vector.load %arg9[%c0_22, %c0_23] : memref<1x128xf32, #tpu.memory_space<vmem>>, vector<1x128xf32>
      tpu.vector_store %arg9[%c0_22, %c0_23], %44 {strides = array<i32>} : memref<1x128xf32, #tpu.memory_space<vmem>>, vector<1x128xf32>,
    } else {
    }
    %c0 = arith.constant 0 : index
    %c0_1 = arith.constant 0 : index
    %7 = vector.load %arg3[%c0, %c0_1] : memref<128x128xf32, #tpu.memory_space<vmem>>, vector<128x128xf32>
    %c0_2 = arith.constant 0 : index
    %c0_3 = arith.constant 0 : index
    %8 = vector.load %arg4[%c0_2, %c0_3] : memref<128x128xf32, #tpu.memory_space<vmem>>, vector<128x128xf32>
    %cst = arith.constant dense<0.000000e+00> : vector<128x128xf32>
    %9 = tpu.matmul %7, %8, %cst {dimension_numbers = #tpu.dot_dimension_numbers<[1], [1], [0], [0], [0, 0, 1, 0], [], []>} : vector<128x128xf32>, vector<128x128xf32>, vector<128x128xf32> -> vector<128x128xf32>
    %c0_4 = arith.constant 0 : index
    %c0_5 = arith.constant 0 : index
    %10 = vector.load %arg5[%c0_4, %c0_5] : memref<128x1xf32, #tpu.memory_space<vmem>>, vector<128x1xf32>
    %c0_6 = arith.constant 0 : index
    %c0_7 = arith.constant 0 : index
    %11 = vector.load %arg6[%c0_6, %c0_7] : memref<1x128xf32, #tpu.memory_space<vmem>>, vector<1x128xf32>
    %12 = vector.broadcast %10 : vector<128x1xf32> to vector<128x128xf32>
    %13 = vector.broadcast %11 : vector<1x128xf32> to vector<128x128xf32>
    %14 = arith.addf %12, %13 : vector<128x128xf32>
    %cst_8 = arith.constant 2.000000e+00 : f32
    %15 = vector.broadcast %cst_8 : f32 to vector<128x128xf32>
    %16 = arith.mulf %15, %9 : vector<128x128xf32>
    %17 = arith.subf %14, %16 : vector<128x128xf32>
    %cst_9 = arith.constant 0.000000e+00 : f32
    %18 = vector.broadcast %cst_9 : f32 to vector<128x128xf32>
    %19 = arith.maximumf %17, %18 : vector<128x128xf32>
    %c0_10 = arith.constant 0 : index
    %c0_11 = arith.constant 0 : index
    %20 = vector.load %arg7[%c0_10, %c0_11] : memref<128x1xi32, #tpu.memory_space<vmem>>, vector<128x1xi32>
    %c0_12 = arith.constant 0 : index
    %c0_13 = arith.constant 0 : index
    %21 = vector.load %arg8[%c0_12, %c0_13] : memref<1x128xi32, #tpu.memory_space<vmem>>, vector<1x128xi32>
    %22 = vector.broadcast %20 : vector<128x1xi32> to vector<128x128xi32>
    %23 = vector.broadcast %21 : vector<1x128xi32> to vector<128x128xi32>
    %24 = arith.cmpi eq, %22, %23 : vector<128x128xi32>
    %25 = math.sqrt %19 : vector<128x128xf32>
    %cst_14 = arith.constant 9.99999971E-10 : f32
    %26 = vector.broadcast %cst_14 : f32 to vector<128x128xf32>
    %27 = arith.addf %25, %26 : vector<128x128xf32>
    %cst_15 = arith.constant 1.000000e+00 : f32
    %28 = vector.broadcast %cst_15 : f32 to vector<128x128xf32>
    %29 = arith.subf %28, %27 : vector<128x128xf32>
    %cst_16 = arith.constant 0.000000e+00 : f32
    %30 = vector.broadcast %cst_16 : f32 to vector<128x128xf32>
    %31 = arith.maximumf %29, %30 : vector<128x128xf32>
    %32 = arith.mulf %31, %31 : vector<128x128xf32>
    %33 = arith.select %24, %19, %32 : vector<128x128xi1>, vector<128x128xf32>
    %34 = arith.cmpi slt, %1, %3 : i32
    %c0_i32_17 = arith.constant 0 : i32
    %35 = arith.cmpi slt, %3, %c0_i32_17 : i32
    %36 = arith.andi %34, %35 : i1
    %37 = arith.extui %36 : i1 to i32
    %c0_i32_18 = arith.constant 0 : i32
    %38 = arith.cmpi ne, %37, %c0_i32_18 : i32
    scf.if %38 {
      %c0_21 = arith.constant 0 : index
      %c0_22 = arith.constant 0 : index
      %44 = vector.load %arg9[%c0_21, %c0_22] : memref<1x128xf32, #tpu.memory_space<vmem>>, vector<1x128xf32>
      %cst_23 = arith.constant dense<0.000000e+00> : vector<128xf32>
      %45 = vector.multi_reduction <add>, %33, %cst_23 [0] : vector<128x128xf32> to vector<128xf32>
      %46 = vector.shape_cast %45 : vector<128xf32> to vector<1x128xf32>
      %47 = arith.addf %44, %46 : vector<1x128xf32>
      %c0_24 = arith.constant 0 : index
      %c0_25 = arith.constant 0 : index
      %48 = vector.load %arg9[%c0_24, %c0_25] : memref<1x128xf32, #tpu.memory_space<vmem>>, vector<1x128xf32>
      tpu.vector_store %arg9[%c0_24, %c0_25], %47 {strides = array<i32>} : memref<1x128xf32, #tpu.memory_space<vmem>>, vector<1x128xf32>,
    } else {
    }
    %39 = arith.cmpi eq, %1, %3 : i32
    %c0_i32_19 = arith.constant 0 : i32
    %40 = arith.cmpi eq, %3, %c0_i32_19 : i32
    %41 = arith.ori %39, %40 : i1
    %42 = arith.extui %41 : i1 to i32
    %c0_i32_20 = arith.constant 0 : i32
    %43 = arith.cmpi ne, %42, %c0_i32_20 : i32
    scf.if %43 {
      %c128_i32 = arith.constant 128 : i32
      %44 = arith.muli %1, %c128_i32 : i32
      %45 = tpu.iota {dimensions = array<i32: 0>} : vector<128x128xi32>
      %46 = vector.broadcast %44 : i32 to vector<128x128xi32>
      %47 = arith.addi %46, %45 : vector<128x128xi32>
      %c128_i32_21 = arith.constant 128 : i32
      %48 = arith.muli %3, %c128_i32_21 : i32
      %49 = tpu.iota {dimensions = array<i32: 1>} : vector<128x128xi32>
      %50 = vector.broadcast %48 : i32 to vector<128x128xi32>
      %51 = arith.addi %50, %49 : vector<128x128xi32>
      %52 = arith.cmpi slt, %47, %51 : vector<128x128xi32>
      %c16_i32 = arith.constant 16 : i32
      %53 = vector.broadcast %c16_i32 : i32 to vector<128x128xi32>
      %54 = arith.cmpi slt, %51, %53 : vector<128x128xi32>
      %55 = arith.andi %52, %54 : vector<128x128xi1>
      %c0_22 = arith.constant 0 : index
      %c0_23 = arith.constant 0 : index
      %56 = vector.load %arg9[%c0_22, %c0_23] : memref<1x128xf32, #tpu.memory_space<vmem>>, vector<1x128xf32>
      %cst_24 = arith.constant 0.000000e+00 : f32
      %57 = vector.broadcast %cst_24 : f32 to vector<128x128xf32>
      %58 = arith.select %55, %33, %57 : vector<128x128xi1>, vector<128x128xf32>
      %cst_25 = arith.constant dense<0.000000e+00> : vector<128xf32>
      %59 = vector.multi_reduction <add>, %58, %cst_25 [0] : vector<128x128xf32> to vector<128xf32>
      %60 = vector.shape_cast %59 : vector<128xf32> to vector<1x128xf32>
      %61 = arith.addf %56, %60 : vector<1x128xf32>
      %c0_26 = arith.constant 0 : index
      %c0_27 = arith.constant 0 : index
      %62 = vector.load %arg9[%c0_26, %c0_27] : memref<1x128xf32, #tpu.memory_space<vmem>>, vector<1x128xf32>
      tpu.vector_store %arg9[%c0_26, %c0_27], %61 {strides = array<i32>} : memref<1x128xf32, #tpu.memory_space<vmem>>, vector<1x128xf32>,
    } else {
    }
    return
  }
  func.func @transform_0(%arg0: i32, %arg1: memref<1xi32, #tpu.memory_space<smem>>, %arg2: memref<1xi32, #tpu.memory_space<smem>>) -> (i32, i32) {
    %0 = arith.index_cast %arg0 : i32 to index
    %1 = memref.load %arg1[%0] : memref<1xi32, #tpu.memory_space<smem>>
    %c0_i32 = arith.constant 0 : i32
    %c0_i32_0 = arith.constant 0 : i32
    return %1, %c0_i32 : i32, i32
  }
  func.func @transform_1(%arg0: i32, %arg1: memref<1xi32, #tpu.memory_space<smem>>, %arg2: memref<1xi32, #tpu.memory_space<smem>>) -> (i32, i32) {
    %0 = arith.index_cast %arg0 : i32 to index
    %1 = memref.load %arg2[%0] : memref<1xi32, #tpu.memory_space<smem>>
    %c0_i32 = arith.constant 0 : i32
    %c0_i32_0 = arith.constant 0 : i32
    return %1, %c0_i32 : i32, i32
  }
  func.func @transform_2(%arg0: i32, %arg1: memref<1xi32, #tpu.memory_space<smem>>, %arg2: memref<1xi32, #tpu.memory_space<smem>>) -> (i32, i32) {
    %0 = arith.index_cast %arg0 : i32 to index
    %1 = memref.load %arg1[%0] : memref<1xi32, #tpu.memory_space<smem>>
    %c0_i32 = arith.constant 0 : i32
    %c0_i32_0 = arith.constant 0 : i32
    return %1, %c0_i32 : i32, i32
  }
  func.func @transform_3(%arg0: i32, %arg1: memref<1xi32, #tpu.memory_space<smem>>, %arg2: memref<1xi32, #tpu.memory_space<smem>>) -> (i32, i32) {
    %0 = arith.index_cast %arg0 : i32 to index
    %1 = memref.load %arg2[%0] : memref<1xi32, #tpu.memory_space<smem>>
    %c0_i32 = arith.constant 0 : i32
    %c0_i32_0 = arith.constant 0 : i32
    return %c0_i32, %1 : i32, i32
  }
  func.func @transform_4(%arg0: i32, %arg1: memref<1xi32, #tpu.memory_space<smem>>, %arg2: memref<1xi32, #tpu.memory_space<smem>>) -> (i32, i32) {
    %0 = arith.index_cast %arg0 : i32 to index
    %1 = memref.load %arg1[%0] : memref<1xi32, #tpu.memory_space<smem>>
    %c0_i32 = arith.constant 0 : i32
    %c0_i32_0 = arith.constant 0 : i32
    return %1, %c0_i32 : i32, i32
  }
  func.func @transform_5(%arg0: i32, %arg1: memref<1xi32, #tpu.memory_space<smem>>, %arg2: memref<1xi32, #tpu.memory_space<smem>>) -> (i32, i32) {
    %0 = arith.index_cast %arg0 : i32 to index
    %1 = memref.load %arg2[%0] : memref<1xi32, #tpu.memory_space<smem>>
    %c0_i32 = arith.constant 0 : i32
    %c0_i32_0 = arith.constant 0 : i32
    return %c0_i32, %1 : i32, i32
  }
  func.func @transform_6(%arg0: i32, %arg1: memref<1xi32, #tpu.memory_space<smem>>, %arg2: memref<1xi32, #tpu.memory_space<smem>>) -> (i32, i32) {
    %c0_i32 = arith.constant 0 : i32
    %c0_i32_0 = arith.constant 0 : i32
    %c0_i32_1 = arith.constant 0 : i32
    return %c0_i32, %c0_i32_0 : i32, i32
  }
}

</mosaic_0001>

<bundles_post_ra>
// kernel: tpu_custom_call.1
= control target key start
LH: loop header
LB: loop body
LE: loop exit
PB: predicated region body
PF: predicated region fallthrough
CT: control target
= control target key end

     0   :  { %15 = vsyncpa [#allocation6], 0  ;;  %v1174_v0 = vmov 0.0   ;;  %v1175_v1 = vmov 0   ;;  %s1866_s0 = inlined_call_operand.<no memory space> [shape: s32[1], index: 0, kind: input, shape index: {}]   ;;  %s1867_s1 = inlined_call_operand.<no memory space> [shape: s32[1], index: 1, kind: input, shape index: {}]   ;;  %s1868_s2 = inlined_call_operand.vmem [shape: f32[128,128], index: 2, kind: input, shape index: {}]   ;;  %s1869_s3 = inlined_call_operand.vmem [shape: f32[128,128], index: 3, kind: input, shape index: {}]   ;;  %s1870_s4 = inlined_call_operand.vmem [shape: f32[128,1], index: 4, kind: input, shape index: {}]   ;;  %s1871_s5 = inlined_call_operand.vmem [shape: f32[1,128], index: 5, kind: input, shape index: {}]   ;;  %s1872_s6 = inlined_call_operand.vmem [shape: s32[128,1], index: 6, kind: input, shape index: {}]   ;;  %s1873_s7 = inlined_call_operand.vmem [shape: s32[1,128], index: 7, kind: input, shape index: {}]   ;;  %s1874_s8 = inlined_call_operand.hbm [shape: f32[1,128], index: 8, kind: output, shape index: {}]  }
   0x1   :  { %s967_s29 = sshll.u32 %s1867_s1, 4  ;;  %s965_s10 = sshll.u32 %s1866_s0, 4  ;;  %150 = vst [vmem:[#allocation5] sm:$0x1] %v1174_v0  ;;  %1117 = vset.pattern.permute.xlu1 %v1175_v1  ;;  %1116 = vset.pattern.permute.xlu0 %v1175_v1 }
   0x2   :  { %p112_p0 = scmp.lt.s32.totalorder %s967_s29, 15  ;;  %p104_p1 = scmp.lt.s32.totalorder %s965_s10, 15 }
   0x3   :  { %p127_p2 = scmp.lt.s32.totalorder %s1867_s1, 0  ;;  %p772_p3 = scmp.lt.s32.totalorder %s1866_s0, %s1867_s1 }
   0x4   :  { %s1893_s29 = smov (!%p112_p0, %s967_s29), 15  ;;  %s1895_s10 = smov (!%p104_p1, %s965_s10), 15 }
   0x5   :  { %s968_s17 = sshll.u32 %s1893_s29, 3  ;;  %p1241_p4 = pnand %p772_p3, %p127_p2 }
   0x6   :  { %s1248_s23 = scalar_lea.vmem %s1869_s3, %s968_s17  ;;  %s1250_s24 = sshll.u32 %s1895_s10, 3 }
   0x7   :  { %v167_v2 = vld [vmem:[%s1248_s23] sm:$0xff]  ;;  %v168_v3 = vld [vmem:[%s1248_s23 + $0x8] sm:$0xff]  ;;  %v169_v4 = vld [vmem:[%s1248_s23 + $0x10] sm:$0xff]  ;;  %s1260_s3 = scalar_lea.vmem %s1868_s2, %s1250_s24  ;;  %s1268_s29 = scalar_lea.vmem %s1870_s4, %s1250_s24 }
   0x8   :  { %v1065_v5 = vpack.c.bf16 %v168_v3, %v167_v2  ;;  %v170_v6 = vld [vmem:[%s1248_s23 + $0x18] sm:$0xff]  ;;  %v151_v8 = vld [vmem:[%s1260_s3] sm:$0xff]  ;;  %v172_v11 = vld [vmem:[%s1248_s23 + $0x28] sm:$0xff]  ;;  %s1298_s30 = scalar_lea.vmem %s1872_s6, %s1250_s24 }
   0x9   :  { %v1069_v7 = vpack.c.bf16 %v170_v6, %v169_v4  ;;  %v159_v9 = vld [vmem:[%s1260_s3 + $0x40] sm:$0xff]  ;;  %1041 = vmatprep.mubr.f32.mxu0 %v151_v8  ;;  %v330_v12 = vld [vmem:[%s1268_s29 + $0x10] sm:$0xff]  ;;  %v331_v15 = vld [vmem:[%s1268_s29 + $0x18] sm:$0xff]  ;;  %s1341_s12 = scalar_select %p127_p2, %s1867_s1, 0 }
   0xa   :  { %1066 = vmatprep.subr.bf16.mxu0 %v1065_v5  ;;  %1097 = vmatprep.subr.bf16.mxu1 %v1065_v5  ;;  %v171_v10 = vld [vmem:[%s1248_s23 + $0x20] sm:$0xff]  ;;  %v329_v16 = vld [vmem:[%s1268_s29 + $0x8] sm:$0xff]  ;;  %v173_v17 = vld [vmem:[%s1248_s23 + $0x30] sm:$0xff] }
   0xb   :  { %1068 = vmatpush3.bf16.xpose.msra.mxu0 %v1065_v5  ;;  %1105 = vmatpush3.bf16.xpose.msra.mxu1 %v1065_v5  ;;  %v328_v13 = vld [vmem:[%s1268_s29] sm:$0xff]  ;;  %v1073_v14 = vpack.c.bf16 %v172_v11, %v171_v10  ;;  %v174_v18 = vld [vmem:[%s1248_s23 + $0x38] sm:$0xff]  ;;  %v333_v19 = vld [vmem:[%s1268_s29 + $0x28] sm:$0xff]  ;;  %s129_s15 = scalar_lea.vmem %s1871_s5, %s1341_s12  ;;  %s142_s17 = scalar_lea.vmem %s1873_s7, %s1341_s12 }
   0xc   :  { %1070 = vmatprep.subr.bf16.mxu0 %v1069_v7  ;;  %1098 = vmatprep.subr.bf16.mxu1 %v1069_v7  ;;  %v332_v20 = vld [vmem:[%s1268_s29 + $0x20] sm:$0xff]  ;;  %v1077_v21 = vpack.c.bf16 %v174_v18, %v173_v17  ;;  %v335_v22 = vld [vmem:[%s1268_s29 + $0x38] sm:$0xff]  ;;  %v334_v23 = vld [vmem:[%s1268_s29 + $0x30] sm:$0xff] }
   0xd   :  { %1053 = vmatprep.mubr.f32.mxu1 %v159_v9  ;;  %357 = vperm.xlu1 %1117, %v330_v12   ;;  %v175_v24 = vld [vmem:[%s1248_s23 + $0x40] sm:$0xff]  ;;  %v176_v25 = vld [vmem:[%s1248_s23 + $0x48] sm:$0xff]  ;;  %v339_v29 = vld [vmem:[%s1268_s29 + $0x58] sm:$0xff] }
   0xe   :  { %347 = vperm.xlu0 %1116, %v328_v13   ;;  %v337_v26 = vld [vmem:[%s1268_s29 + $0x48] sm:$0xff]  ;;  %v336_v27 = vld [vmem:[%s1268_s29 + $0x40] sm:$0xff]  ;;  %v1081_v28 = vpack.c.bf16 %v176_v25, %v175_v24  ;;  %v338_v30 = vld [vmem:[%s1268_s29 + $0x50] sm:$0xff] }
   0xf   :  { %v177_v31 = vld [vmem:[%s1248_s23 + $0x50] sm:$0xff]  ;;  %v178_v32 = vld [vmem:[%s1248_s23 + $0x58] sm:$0xff]  ;;  %v341_v33 = vld [vmem:[%s1268_s29 + $0x68] sm:$0xff] }
  0x10   :  { %v340_v34 = vld [vmem:[%s1268_s29 + $0x60] sm:$0xff]  ;;  %v1085_v35 = vpack.c.bf16 %v178_v32, %v177_v31  ;;  %v343_v36 = vld [vmem:[%s1268_s29 + $0x78] sm:$0xff]  ;;  %v342_v37 = vld [vmem:[%s1268_s29 + $0x70] sm:$0xff] }
  0x11   :  { %362 = vperm.xlu1 %1117, %v331_v15   ;;  %v179_v38 = vld [vmem:[%s1248_s23 + $0x60] sm:$0xff]  ;;  %v180_v39 = vld [vmem:[%s1248_s23 + $0x68] sm:$0xff]  ;;  %v498_v43 = vld [vmem:[%s1298_s30 + $0x18] sm:$0xff] }
  0x12   :  { %352 = vperm.xlu0 %1116, %v329_v16   ;;  %v496_v40 = vld [vmem:[%s1298_s30 + $0x8] sm:$0xff]  ;;  %v495_v41 = vld [vmem:[%s1298_s30] sm:$0xff]  ;;  %v1089_v42 = vpack.c.bf16 %v180_v39, %v179_v38  ;;  %v497_v44 = vld [vmem:[%s1298_s30 + $0x10] sm:$0xff] }
  0x13   :  { %1072 = vmatpush3.bf16.xpose.msra.mxu0 %v1069_v7  ;;  %1106 = vmatpush3.bf16.xpose.msra.mxu1 %v1069_v7  ;;  %v181_v45 = vld [vmem:[%s1248_s23 + $0x70] sm:$0xff]  ;;  %v182_v46 = vld [vmem:[%s1248_s23 + $0x78] sm:$0xff]  ;;  %v500_v47 = vld [vmem:[%s1298_s30 + $0x28] sm:$0xff] }
  0x14   :  { %1074 = vmatprep.subr.bf16.mxu0 %v1073_v14  ;;  %1099 = vmatprep.subr.bf16.mxu1 %v1073_v14  ;;  %v499_v48 = vld [vmem:[%s1298_s30 + $0x20] sm:$0xff]  ;;  %v1093_v49 = vpack.c.bf16 %v182_v46, %v181_v45  ;;  %v502_v50 = vld [vmem:[%s1298_s30 + $0x38] sm:$0xff]  ;;  %v501_v51 = vld [vmem:[%s1298_s30 + $0x30] sm:$0xff] }
  0x15   :  { %372 = vperm.xlu1 %1117, %v333_v19   ;;  %v504_v52 = vld [vmem:[%s1298_s30 + $0x48] sm:$0xff]  ;;  %v503_v53 = vld [vmem:[%s1298_s30 + $0x40] sm:$0xff]  ;;  %v506_v54 = vld [vmem:[%s1298_s30 + $0x58] sm:$0xff] }
  0x16   :  { %367 = vperm.xlu0 %1116, %v332_v20   ;;  %v505_v55 = vld [vmem:[%s1298_s30 + $0x50] sm:$0xff]  ;;  %v508_v56 = vld [vmem:[%s1298_s30 + $0x68] sm:$0xff]  ;;  %v507_v57 = vld [vmem:[%s1298_s30 + $0x60] sm:$0xff] }
  0x17   :  { %v152_v58 = vld [vmem:[%s1260_s3 + $0x8] sm:$0xff]  ;;  %v153_v60 = vld [vmem:[%s1260_s3 + $0x10] sm:$0xff]  ;;  %v510_v62 = vld [vmem:[%s1298_s30 + $0x78] sm:$0xff] }
  0x18   :  { %v160_v59 = vld [vmem:[%s1260_s3 + $0x48] sm:$0xff]  ;;  %v161_v61 = vld [vmem:[%s1260_s3 + $0x50] sm:$0xff]  ;;  %v154_v0 = vld [vmem:[%s1260_s3 + $0x18] sm:$0xff] }
  0x19   :  { %382 = vperm.xlu1 %1117, %v335_v22   ;;  %v509_v63 = vld [vmem:[%s1298_s30 + $0x70] sm:$0xff]  ;;  %v162_v1 = vld [vmem:[%s1260_s3 + $0x58] sm:$0xff]  ;;  %v155_v2 = vld [vmem:[%s1260_s3 + $0x20] sm:$0xff] }
  0x1a   :  { %377 = vperm.xlu0 %1116, %v334_v23   ;;  %v163_v3 = vld [vmem:[%s1260_s3 + $0x60] sm:$0xff]  ;;  %v156_v4 = vld [vmem:[%s1260_s3 + $0x28] sm:$0xff]  ;;  %v157_v6 = vld [vmem:[%s1260_s3 + $0x30] sm:$0xff] }
  0x1b   :  { %1076 = vmatpush3.bf16.xpose.msra.mxu0 %v1073_v14  ;;  %1107 = vmatpush3.bf16.xpose.msra.mxu1 %v1073_v14  ;;  %v164_v5 = vld [vmem:[%s1260_s3 + $0x68] sm:$0xff]  ;;  %v165_v7 = vld [vmem:[%s1260_s3 + $0x70] sm:$0xff]  ;;  %v158_v8 = vld [vmem:[%s1260_s3 + $0x38] sm:$0xff] }
  0x1c   :  { %1078 = vmatprep.subr.bf16.mxu0 %v1077_v21  ;;  %1100 = vmatprep.subr.bf16.mxu1 %v1077_v21  ;;  %v166_v9 = vld [vmem:[%s1260_s3 + $0x78] sm:$0xff] }
  0x1d   :  { %392 = vperm.xlu1 %1117, %v337_v26  }
  0x1e   :  { %387 = vperm.xlu0 %1116, %v336_v27  }
  0x21   :  { %402 = vperm.xlu1 %1117, %v339_v29  }
  0x22   :  { %397 = vperm.xlu0 %1116, %v338_v30  }
  0x23   :  { %1080 = vmatpush3.bf16.xpose.msra.mxu0 %v1077_v21  ;;  %1108 = vmatpush3.bf16.xpose.msra.mxu1 %v1077_v21 }
  0x24   :  { %1082 = vmatprep.subr.bf16.mxu0 %v1081_v28  ;;  %1101 = vmatprep.subr.bf16.mxu1 %v1081_v28 }
  0x25   :  { %412 = vperm.xlu1 %1117, %v341_v33  }
  0x26   :  { %407 = vperm.xlu0 %1116, %v340_v34  }
  0x29   :  { %422 = vperm.xlu1 %1117, %v343_v36  }
  0x2a   :  { %417 = vperm.xlu0 %1116, %v342_v37  }
  0x2b   :  { %1084 = vmatpush3.bf16.xpose.msra.mxu0 %v1081_v28  ;;  %1109 = vmatpush3.bf16.xpose.msra.mxu1 %v1081_v28  ;;  %v973_v28 = vld [vmem:[%s129_s15] ss:$0 sm:$0xff] }
  0x2c   :  { %1086 = vmatprep.subr.bf16.mxu0 %v1085_v35  ;;  %1102 = vmatprep.subr.bf16.mxu1 %v1085_v35 }
  0x2d   :  { %516 = vperm.xlu1 %1117, %v496_v40  }
  0x2e   :  { %513 = vperm.xlu0 %1116, %v495_v41  }
  0x31   :  { %522 = vperm.xlu1 %1117, %v498_v43  }
  0x32   :  { %519 = vperm.xlu0 %1116, %v497_v44  }
  0x33   :  { %1088 = vmatpush3.bf16.xpose.msra.mxu0 %v1085_v35  ;;  %1110 = vmatpush3.bf16.xpose.msra.mxu1 %v1085_v35 }
  0x34   :  { %1090 = vmatprep.subr.bf16.mxu0 %v1089_v42  ;;  %1103 = vmatprep.subr.bf16.mxu1 %v1089_v42 }
  0x35   :  { %528 = vperm.xlu1 %1117, %v500_v47  }
  0x36   :  { %525 = vperm.xlu0 %1116, %v499_v48  }
  0x39   :  { %534 = vperm.xlu1 %1117, %v502_v50  }
  0x3a   :  { %531 = vperm.xlu0 %1116, %v501_v51  }
  0x3b   :  { %1092 = vmatpush3.bf16.xpose.msra.mxu0 %v1089_v42  ;;  %1111 = vmatpush3.bf16.xpose.msra.mxu1 %v1089_v42 }
  0x3c   :  { %1094 = vmatprep.subr.bf16.mxu0 %v1093_v49  ;;  %1104 = vmatprep.subr.bf16.mxu1 %v1093_v49 }
  0x3d   :  { %540 = vperm.xlu1 %1117, %v504_v52  }
  0x3e   :  { %537 = vperm.xlu0 %1116, %v503_v53  }
  0x41   :  { %546 = vperm.xlu1 %1117, %v506_v54  }
  0x42   :  { %543 = vperm.xlu0 %1116, %v505_v55  }
  0x43   :  { %1096 = vmatpush3.bf16.xpose.msra.mxu0 %v1093_v49  ;;  %1112 = vmatpush3.bf16.xpose.msra.mxu1 %v1093_v49 }
  0x45   :  { %552 = vperm.xlu1 %1117, %v508_v56  }
  0x46   :  { %549 = vperm.xlu0 %1116, %v507_v57  }
  0x49   :  { %558 = vperm.xlu1 %1117, %v510_v62  }
  0x4a   :  { %1042 = vmatmul.mubr.f32.vlgmr.msra.gmra.mrb[0].mxu0 %v152_v58  ;;  %1054 = vmatmul.mubr.f32.vlgmr.msra.gmra.mrb[0].mxu1 %v160_v59 }
  0x4b   :  { %1044 = vmatprep.mubr.f32.mxu0 %v153_v60  ;;  %1056 = vmatprep.mubr.f32.mxu1 %v161_v61 }
  0x4c   :  { %555 = vperm.xlu0 %1116, %v509_v63  }
  0x4e   :  { %1045 = vmatmul.mubr.f32.gmra.mrb[2].mxu0 %v154_v0  ;;  %1057 = vmatmul.mubr.f32.gmra.mrb[2].mxu1 %v162_v1 }
  0x4f   :  { %1047 = vmatprep.mubr.f32.mxu0 %v155_v2  ;;  %1059 = vmatprep.mubr.f32.mxu1 %v163_v3 }
  0x52   :  { %1048 = vmatmul.mubr.f32.gmra.mrb[4].mxu0 %v156_v4  ;;  %1060 = vmatmul.mubr.f32.gmra.mrb[4].mxu1 %v164_v5 }
  0x53   :  { %1050 = vmatprep.mubr.f32.mxu0 %v157_v6  ;;  %1062 = vmatprep.mubr.f32.mxu1 %v165_v7 }
  0x56   :  { %1051 = vmatmul.mubr.f32.gmra.mrb[6].mxu0 %v158_v8  ;;  %1063 = vmatmul.mubr.f32.gmra.mrb[6].mxu1 %v166_v9 }
  0x8c   :  { %v358_v10 = vpop.permute.xlu1 %357 }
  0x8d   :  { %v348_v11 = vpop.permute.xlu0 %347  ;;  %v433_v49 = vadd.f32 %v973_v28, %v358_v10 }
  0x8e   :  { %v431_v38 = vadd.f32 %v973_v28, %v348_v11 }
  0x90   :  { %v363_v12 = vpop.permute.xlu1 %362 }
  0x91   :  { %v353_v13 = vpop.permute.xlu0 %352  ;;  %v434_v50 = vadd.f32 %v973_v28, %v363_v12 }
  0x92   :  { %v432_v32 = vadd.f32 %v973_v28, %v353_v13 }
  0x94   :  { %v373_v14 = vpop.permute.xlu1 %372 }
  0x95   :  { %v368_v15 = vpop.permute.xlu0 %367  ;;  %v1359_v55 = vadd.f32 %v973_v28, %v373_v14 }
  0x96   :  { %v1368_v63 = vadd.f32 %v973_v28, %v368_v15 }
  0x98   :  { %v383_v16 = vpop.permute.xlu1 %382 }
  0x99   :  { %v378_v17 = vpop.permute.xlu0 %377  ;;  %v1370_v0 = vadd.f32 %v973_v28, %v383_v16 }
  0x9a   :  { %v1372_v1 = vadd.f32 %v973_v28, %v378_v17 }
  0x9c   :  { %v393_v18 = vpop.permute.xlu1 %392 }
  0x9d   :  { %v388_v19 = vpop.permute.xlu0 %387  ;;  %v440_v33 = vadd.f32 %v973_v28, %v393_v18 }
  0x9e   :  { %v439_v39 = vadd.f32 %v973_v28, %v388_v19 }
  0xa0   :  { %v403_v20 = vpop.permute.xlu1 %402 }
  0xa1   :  { %v398_v21 = vpop.permute.xlu0 %397  ;;  %v442_v4 = vadd.f32 %v973_v28, %v403_v20 }
  0xa2   :  { %v441_v5 = vadd.f32 %v973_v28, %v398_v21 }
  0xa4   :  { %v413_v22 = vpop.permute.xlu1 %412 }
  0xa5   :  { %v408_v23 = vpop.permute.xlu0 %407  ;;  %v1375_v6 = vadd.f32 %v973_v28, %v413_v22 }
  0xa6   :  { %v1378_v9 = vadd.f32 %v973_v28, %v408_v23 }
  0xa8   :  { %v423_v24 = vpop.permute.xlu1 %422 }
  0xa9   :  { %v418_v25 = vpop.permute.xlu0 %417  ;;  %v1380_v10 = vadd.f32 %v973_v28, %v423_v24 }
  0xaa   :  { %v1382_v11 = vadd.f32 %v973_v28, %v418_v25 }
  0xac   :  { %v1343_v26 = vpop.permute.xlu1 %516 }
  0xad   :  { %v1349_v27 = vpop.permute.xlu0 %513 }
  0xb0   :  { %v1351_v29 = vpop.permute.xlu1 %522 }
  0xb1   :  { %v1353_v42 = vpop.permute.xlu0 %519 }
  0xb4   :  { %v1365_v59 = vpop.permute.xlu1 %528 }
  0xb5   :  { %v1385_v12 = vpop.permute.xlu0 %525 }
 0x11d   :  { %v1043_v30 = vpop.f32.mrb[0].mxu0  ;;  %v1055_v31 = vpop.f32.mrb[0].mxu1 }
 0x11e   :  { %v448_v34 = vmul.f32 2.0, %v1043_v30  ;;  %v456_v35 = vmul.f32 2.0, %v1055_v31  ;;  %v249_v36 = vpop.f32.mrb[1].mxu0  ;;  %v289_v37 = vpop.f32.mrb[1].mxu1 }
 0x11f   :  { %v447_v40 = vmul.f32 2.0, %v249_v36  ;;  %v455_v41 = vmul.f32 2.0, %v289_v37 }
 0x120   :  { %v464_v43 = vsub.f32 %v432_v32, %v448_v34  ;;  %v472_v44 = vsub.f32 %v440_v33, %v456_v35  ;;  %v1412_v32 = vpop.permute.xlu1 %534 }
 0x121   :  { %v463_v45 = vsub.f32 %v431_v38, %v447_v40  ;;  %v471_v46 = vsub.f32 %v439_v39, %v455_v41  ;;  %v1046_v47 = vpop.f32.mrb[2].mxu0  ;;  %v1058_v48 = vpop.f32.mrb[2].mxu1  ;;  %v1429_v41 = vld [vmem:[%s142_s17] ss:$0 sm:$0xff] }
 0x122   :  { %v1355_v51 = vmax.f32 %v464_v43, 0.0  ;;  %v1357_v52 = vmax.f32 %v472_v44, 0.0  ;;  %v259_v53 = vpop.f32.mrb[3].mxu0  ;;  %v299_v54 = vpop.f32.mrb[3].mxu1  ;;  %v450_v58 = vmul.f32 2.0, %v1046_v47  ;;  %v458_v60 = vmul.f32 2.0, %v1058_v48 }
 0x123   :  { %v1361_v56 = vmax.f32 %v463_v45, 0.0  ;;  %v1363_v57 = vmax.f32 %v471_v46, 0.0  ;;  %v449_v61 = vmul.f32 2.0, %v259_v53  ;;  %v457_v62 = vmul.f32 2.0, %v299_v54  ;;  %v1423_v38 = vpop.permute.xlu0 %531 }
 0x124   :  { %1118 = vrsqrt.f32 %v1355_v51  ;;  %v466_v13 = vsub.f32 %v434_v50, %v450_v58  ;;  %v474_v14 = vsub.f32 %v442_v4, %v458_v60  ;;  %vm589_vm0 = vcmp.eq.f32.partialorder %v1355_v51, inf }
 0x125   :  { %1120 = vrsqrt.f32 %v1357_v52  ;;  %v1049_v2 = vpop.f32.mrb[4].mxu0  ;;  %v1061_v3 = vpop.f32.mrb[4].mxu1  ;;  %v465_v15 = vsub.f32 %v433_v49, %v449_v61  ;;  %v473_v16 = vsub.f32 %v441_v5, %v457_v62  ;;  %vm591_vm1 = vcmp.eq.f32.partialorder %v1355_v51, 0.0 }
 0x126   :  { %1122 = vrsqrt.f32 %v1361_v56  ;;  %v269_v7 = vpop.f32.mrb[5].mxu0  ;;  %v309_v8 = vpop.f32.mrb[5].mxu1  ;;  %v452_v17 = vmul.f32 2.0, %v1049_v2  ;;  %v460_v18 = vmul.f32 2.0, %v1061_v3  ;;  %v592_v21 = vand.u32 2147483648, %v1355_v51 }
 0x127   :  { %1124 = vrsqrt.f32 %v1363_v57  ;;  %v1394_v22 = vmax.f32 %v466_v13, 0.0  ;;  %v1396_v23 = vmax.f32 %v474_v14, 0.0  ;;  %v1398_v24 = vmax.f32 %v465_v15, 0.0  ;;  %v541_v61 = vpop.permute.xlu1 %540 }
 0x128   :  { %vm645_vm2 = vcmp.eq.f32.partialorder %v1357_v52, inf  ;;  %vm647_vm3 = vcmp.eq.f32.partialorder %v1357_v52, 0.0  ;;  %v451_v30 = vmul.f32 2.0, %v269_v7  ;;  %v1406_v31 = vmul.f32 2.0, %v309_v8  ;;  %v538_v7 = vpop.permute.xlu0 %537 }
 0x129   :  { %v1389_v19 = vpop.f32.mrb[6].mxu0  ;;  %v1391_v20 = vpop.f32.mrb[6].mxu1  ;;  %v648_v33 = vand.u32 2147483648, %v1357_v52  ;;  %1126 = vrsqrt.f32 %v1394_v22  ;;  %v1416_v34 = vmax.f32 %v473_v16, 0.0  ;;  %v468_v35 = vsub.f32 %v1359_v55, %v452_v17 }
 0x12a   :  { %v1400_v25 = vpop.f32.mrb[7].mxu0  ;;  %v1402_v28 = vpop.f32.mrb[7].mxu1  ;;  %vm582_vm4 = vcmp.eq.f32.partialorder %v1361_v56, inf  ;;  %vm584_vm5 = vcmp.eq.f32.partialorder %v1361_v56, 0.0  ;;  %1128 = vrsqrt.f32 %v1396_v23  ;;  %v476_v36 = vsub.f32 %v1375_v6, %v460_v18 }
 0x12b   :  { %v585_v39 = vand.u32 2147483648, %v1361_v56  ;;  %vm638_vm6 = vcmp.eq.f32.partialorder %v1363_v57, inf  ;;  %vm640_vm7 = vcmp.eq.f32.partialorder %v1363_v57, 0.0  ;;  %1130 = vrsqrt.f32 %v1398_v24 }
 0x12c   :  { %v641_v44 = vand.u32 2147483648, %v1363_v57  ;;  %v467_v45 = vsub.f32 %v1368_v63, %v451_v30  ;;  %v475_v46 = vsub.f32 %v1378_v9, %v1406_v31  ;;  %vm603_vm8 = vcmp.eq.f32.partialorder %v1394_v22, inf }
 0x12d   :  { %v606_v49 = vand.u32 2147483648, %v1394_v22  ;;  %1132 = vrsqrt.f32 %v1416_v34  ;;  %v1440_v50 = vmax.f32 %v468_v35, 0.0  ;;  %vm605_vm9 = vcmp.eq.f32.partialorder %v1394_v22, 0.0 }
 0x12e   :  { %v1119_v37 = vpop.eup %1118  ;;  %vm659_vm10 = vcmp.eq.f32.partialorder %v1396_v23, inf  ;;  %v662_v58 = vand.u32 2147483648, %v1396_v23  ;;  %v1449_v60 = vmax.f32 %v476_v36, 0.0  ;;  %vm565_vm11 = vcmp.eq.s32.totalorder %v1343_v26, %v1429_v41 }
 0x12f   :  { %v1121_v40 = vpop.eup %1120  ;;  %v588_v43 = vmul.f32 %v1119_v37, %v1355_v51  ;;  %vm661_vm12 = vcmp.eq.f32.partialorder %v1396_v23, 0.0  ;;  %1134 = vrsqrt.f32 %v1440_v50  ;;  %vm573_vm13 = vcmp.eq.s32.totalorder %v541_v61, %v1429_v41 }
 0x130   :  { %v1123_v47 = vpop.eup %1122  ;;  %v644_v48 = vmul.f32 %v1121_v40, %v1357_v52  ;;  %vm596_vm14 = vcmp.eq.f32.partialorder %v1398_v24, inf  ;;  %v599_v6 = vand.u32 2147483648, %v1398_v24  ;;  %vm564_vm15 = vcmp.eq.s32.totalorder %v1349_v27, %v1429_v41 }
 0x131   :  { %v1125_v53 = vpop.eup %1124  ;;  %v590_v54 = vsel %vm589_vm0, %v1355_v51, %v588_v43  ;;  %v581_v55 = vmul.f32 %v1123_v47, %v1361_v56  ;;  %vm598_vm0 = vcmp.eq.f32.partialorder %v1398_v24, 0.0  ;;  %v655_v14 = vand.u32 2147483648, %v1416_v34 }
 0x132   :  { %v593_v62 = vsel %vm591_vm1, %v592_v21, %v590_v54  ;;  %v646_v63 = vsel %vm645_vm2, %v1357_v52, %v644_v48  ;;  %v637_v2 = vmul.f32 %v1125_v53, %v1363_v57  ;;  %vm572_vm1 = vcmp.eq.s32.totalorder %v538_v7, %v1429_v41 }
 0x133   :  { %v693_v3 = vadd.f32 1e-09, %v593_v62  ;;  %v649_v4 = vsel %vm647_vm3, %v648_v33, %v646_v63  ;;  %v583_v5 = vsel %vm582_vm4, %v1361_v56, %v581_v55  ;;  %v1481_v18 = vmax.f32 %v467_v45, 0.0  ;;  %v1127_v21 = vpop.eup %1126  ;;  %v547_v62 = vpop.permute.xlu1 %546 }
 0x134   :  { %v701_v8 = vadd.f32 1e-09, %v649_v4  ;;  %v586_v9 = vsel %vm584_vm5, %v585_v39, %v583_v5  ;;  %v639_v13 = vsel %vm638_vm6, %v1363_v57, %v637_v2  ;;  %vm652_vm2 = vcmp.eq.f32.partialorder %v1416_v34, inf  ;;  %v1129_v35 = vpop.eup %1128 }
 0x135   :  { %v709_v15 = vsub.f32 1.0, %v693_v3  ;;  %v692_v16 = vadd.f32 1e-09, %v586_v9  ;;  %v642_v17 = vsel %vm640_vm7, %v641_v44, %v639_v13  ;;  %1136 = vrsqrt.f32 %v1449_v60  ;;  %v1131_v40 = vpop.eup %1130 }
 0x136   :  { %v717_v30 = vsub.f32 1.0, %v701_v8  ;;  %v700_v31 = vadd.f32 1e-09, %v642_v17  ;;  %v1485_v33 = vmax.f32 %v475_v46, 0.0  ;;  %v602_v39 = vmul.f32 %v1127_v21, %v1394_v22 }
 0x137   :  { %v725_v36 = vmax.f32 %v709_v15, 0.0  ;;  %v708_v37 = vsub.f32 1.0, %v692_v16  ;;  %vm654_vm3 = vcmp.eq.f32.partialorder %v1416_v34, 0.0  ;;  %vm617_vm4 = vcmp.eq.f32.partialorder %v1440_v50, inf  ;;  %v1133_v55 = vpop.eup %1132 }
 0x138   :  { %v733_v43 = vmax.f32 %v717_v30, 0.0  ;;  %v716_v44 = vsub.f32 1.0, %v700_v31  ;;  %v658_v45 = vmul.f32 %v1129_v35, %v1396_v23  ;;  %vm619_vm5 = vcmp.eq.f32.partialorder %v1440_v50, 0.0 }
 0x139   :  { %v620_v47 = vand.u32 2147483648, %v1440_v50  ;;  %v741_v46 = vmul.f32 %v725_v36, %v725_v36  ;;  %v724_v48 = vmax.f32 %v708_v37, 0.0  ;;  %v604_v53 = vsel %vm603_vm8, %v1394_v22, %v602_v39  ;;  %v1135_v15 = vpop.eup %1134 }
 0x13a   :  { %v595_v54 = vmul.f32 %v1131_v40, %v1398_v24  ;;  %vm567_vm6 = vcmp.eq.s32.totalorder %v1351_v29, %v1429_v41  ;;  %v749_v63 = vmul.f32 %v733_v43, %v733_v43  ;;  %v732_v2 = vmax.f32 %v716_v44, 0.0  ;;  %v544_v29 = vpop.permute.xlu0 %543 }
 0x13b   :  { %v607_v3 = vsel %vm605_vm9, %v606_v49, %v604_v53  ;;  %v660_v4 = vsel %vm659_vm10, %v1396_v23, %v658_v45  ;;  %vm575_vm7 = vcmp.eq.s32.totalorder %v547_v62, %v1429_v41  ;;  %v1511_v5 = vsel %vm565_vm11, %v1355_v51, %v741_v46 }
 0x13c   :  { %v740_v8 = vmul.f32 %v724_v48, %v724_v48  ;;  %v695_v9 = vadd.f32 1e-09, %v607_v3  ;;  %v663_v13 = vsel %vm661_vm12, %v662_v58, %v660_v4  ;;  %v1518_v49 = vsel %vm573_vm13, %v1357_v52, %v749_v63 }
 0x13d   :  { %v748_v16 = vmul.f32 %v732_v2, %v732_v2  ;;  %v703_v17 = vadd.f32 1e-09, %v663_v13  ;;  %v597_v21 = vsel %vm596_vm14, %v1398_v24, %v595_v54  ;;  %v651_v61 = vmul.f32 %v1133_v55, %v1416_v34 }
 0x13e   :  { %v1527_v26 = vsel %vm564_vm15, %v1361_v56, %v740_v8  ;;  %v711_v51 = vsub.f32 1.0, %v695_v9  ;;  %v600_v58 = vsel %vm598_vm0, %v599_v6, %v597_v21  ;;  %v616_v35 = vmul.f32 %v1135_v15, %v1440_v50 }
 0x13f   :  { %v1535_v52 = vsel %vm572_vm1, %v1363_v57, %v748_v16  ;;  %v719_v30 = vsub.f32 1.0, %v703_v17  ;;  %v694_v31 = vadd.f32 1e-09, %v600_v58  ;;  %v653_v27 = vsel %vm652_vm2, %v1416_v34, %v651_v61  ;;  %v1137_v56 = vpop.eup %1136 }
 0x140   :  { %v727_v36 = vmax.f32 %v711_v51, 0.0  ;;  %vm673_vm8 = vcmp.eq.f32.partialorder %v1449_v60, inf  ;;  %1138 = vrsqrt.f32 %v1481_v18  ;;  %v656_v57 = vsel %vm654_vm3, %v655_v14, %v653_v27 }
 0x141   :  { %v735_v6 = vmax.f32 %v719_v30, 0.0  ;;  %v710_v37 = vsub.f32 1.0, %v694_v31  ;;  %v618_v7 = vsel %vm617_vm4, %v1440_v50, %v616_v35  ;;  %v702_v40 = vadd.f32 1e-09, %v656_v57  ;;  %v553_v30 = vpop.permute.xlu1 %552 }
 0x142   :  { %v743_v39 = vmul.f32 %v727_v36, %v727_v36  ;;  %v621_v43 = vsel %vm619_vm5, %v620_v47, %v618_v7  ;;  %v672_v44 = vmul.f32 %v1137_v56, %v1449_v60  ;;  %v676_v53 = vand.u32 2147483648, %v1449_v60 }
 0x143   :  { %v751_v45 = vmul.f32 %v735_v6, %v735_v6  ;;  %v726_v46 = vmax.f32 %v710_v37, 0.0  ;;  %v697_v48 = vadd.f32 1e-09, %v621_v43  ;;  %v718_v54 = vsub.f32 1.0, %v702_v40  ;;  %v550_v43 = vpop.permute.xlu0 %549 }
 0x144   :  { %v1556_v14 = vsel %vm567_vm6, %v1394_v22, %v743_v39  ;;  %v674_v55 = vsel %vm673_vm8, %v1449_v60, %v672_v44  ;;  %vm675_vm9 = vcmp.eq.f32.partialorder %v1449_v60, 0.0  ;;  %vm566_vm10 = vcmp.eq.s32.totalorder %v1353_v42, %v1429_v41 }
 0x145   :  { %v1565_v47 = vsel %vm575_vm7, %v1396_v23, %v751_v45  ;;  %v742_v63 = vmul.f32 %v726_v46, %v726_v46  ;;  %v713_v2 = vsub.f32 1.0, %v697_v48  ;;  %v677_v3 = vsel %vm675_vm9, %v676_v53, %v674_v55 }
 0x146   :  { %v734_v22 = vmax.f32 %v718_v54, 0.0  ;;  %v705_v4 = vadd.f32 1e-09, %v677_v3  ;;  %1140 = vrsqrt.f32 %v1485_v33  ;;  %vm569_vm11 = vcmp.eq.s32.totalorder %v1365_v59, %v1429_v41 }
 0x147   :  { %vm574_vm12 = vcmp.eq.s32.totalorder %v544_v29, %v1429_v41  ;;  %v1574_v62 = vsel %vm566_vm10, %v1398_v24, %v742_v63  ;;  %v729_v23 = vmax.f32 %v713_v2, 0.0  ;;  %v454_v13 = vmul.f32 2.0, %v1389_v19 }
 0x148   :  { %v750_v8 = vmul.f32 %v734_v22, %v734_v22  ;;  %v721_v9 = vsub.f32 1.0, %v705_v4  ;;  %v462_v42 = vmul.f32 2.0, %v1391_v20  ;;  %vm610_vm13 = vcmp.eq.f32.partialorder %v1481_v18, inf }
 0x149   :  { %v745_v15 = vmul.f32 %v729_v23, %v729_v23  ;;  %v453_v16 = vmul.f32 2.0, %v1400_v25  ;;  %v461_v17 = vmul.f32 2.0, %v1402_v28  ;;  %v470_v58 = vsub.f32 %v1370_v0, %v454_v13 }
 0x14a   :  { %v1139_v21 = vpop.eup %1138  ;;  %v1582_v51 = vsel %vm574_vm12, %v1416_v34, %v750_v8  ;;  %v737_v24 = vmax.f32 %v721_v9, 0.0  ;;  %v478_v61 = vsub.f32 %v1380_v10, %v462_v42  ;;  %v613_v31 = vand.u32 2147483648, %v1481_v18 }
 0x14b   :  { %v1590_v19 = vsel %vm569_vm11, %v1440_v50, %v745_v15  ;;  %v609_v20 = vmul.f32 %v1139_v21, %v1481_v18  ;;  %v469_v25 = vsub.f32 %v1372_v1, %v453_v16  ;;  %v477_v28 = vsub.f32 %v1382_v11, %v461_v17 }
 0x14c   :  { %v753_v34 = vmul.f32 %v737_v24, %v737_v24  ;;  %v1596_v35 = vmax.f32 %v470_v58, 0.0  ;;  %v1598_v0 = vmax.f32 %v478_v61, 0.0  ;;  %vm577_vm14 = vcmp.eq.s32.totalorder %v553_v30, %v1429_v41 }
 0x14d   :  { %v611_v59 = vsel %vm610_vm13, %v1481_v18, %v609_v20  ;;  %vm612_vm15 = vcmp.eq.f32.partialorder %v1481_v18, 0.0  ;;  %v1605_v10 = vmax.f32 %v469_v25, 0.0  ;;  %v1611_v50 = vmax.f32 %v477_v28, 0.0 }
 0x14e   :  { %v1608_v1 = vsel %vm577_vm14, %v1449_v60, %v753_v34  ;;  %v614_v11 = vsel %vm612_vm15, %v613_v31, %v611_v59  ;;  %1142 = vrsqrt.f32 %v1596_v35  ;;  %vm666_vm0 = vcmp.eq.f32.partialorder %v1485_v33, inf  ;;  %v559_v34 = vpop.permute.xlu1 %558 }
 0x14f   :  { %v696_v36 = vadd.f32 1e-09, %v614_v11  ;;  %1144 = vrsqrt.f32 %v1598_v0  ;;  %v669_v37 = vand.u32 2147483648, %v1485_v33  ;;  %vm668_vm1 = vcmp.eq.f32.partialorder %v1485_v33, 0.0 }
 0x150   :  { %v1141_v27 = vpop.eup %1140  ;;  %1146 = vrsqrt.f32 %v1605_v10  ;;  %vm568_vm2 = vcmp.eq.s32.totalorder %v1385_v12, %v1429_v41  ;;  %vm576_vm3 = vcmp.eq.s32.totalorder %v550_v43, %v1429_v41  ;;  %vm631_vm4 = vcmp.eq.f32.partialorder %v1596_v35, inf }
 0x151   :  { %v712_v56 = vsub.f32 1.0, %v696_v36  ;;  %v665_v6 = vmul.f32 %v1141_v27, %v1485_v33  ;;  %1148 = vrsqrt.f32 %v1611_v50  ;;  %vm633_vm5 = vcmp.eq.f32.partialorder %v1596_v35, 0.0 }
 0x152   :  { %v634_v55 = vand.u32 2147483648, %v1596_v35  ;;  %vm687_vm6 = vcmp.eq.f32.partialorder %v1598_v0, inf  ;;  %vm689_vm7 = vcmp.eq.f32.partialorder %v1598_v0, 0.0  ;;  %vm624_vm8 = vcmp.eq.f32.partialorder %v1605_v10, inf }
 0x153   :  { %v728_v60 = vmax.f32 %v712_v56, 0.0  ;;  %v667_v57 = vsel %vm666_vm0, %v1485_v33, %v665_v6  ;;  %vm626_vm9 = vcmp.eq.f32.partialorder %v1605_v10, 0.0  ;;  %v627_v8 = vand.u32 2147483648, %v1605_v10 }
 0x154   :  { %v670_v7 = vsel %vm668_vm1, %v669_v37, %v667_v57  ;;  %vm680_vm10 = vcmp.eq.f32.partialorder %v1611_v50, inf  ;;  %v683_v61 = vand.u32 2147483648, %v1611_v50  ;;  %vm682_vm11 = vcmp.eq.f32.partialorder %v1611_v50, 0.0 }
 0x155   :  { %v744_v39 = vmul.f32 %v728_v60, %v728_v60  ;;  %v704_v40 = vadd.f32 1e-09, %v670_v7  ;;  %vm571_vm12 = vcmp.eq.s32.totalorder %v1412_v32, %v1429_v41  ;;  %vm579_vm13 = vcmp.eq.s32.totalorder %v559_v34, %v1429_v41  ;;  %v556_v60 = vpop.permute.xlu0 %555 }
 0x156   :  { %vm570_vm14 = vcmp.eq.s32.totalorder %v1423_v38, %v1429_v41  ;;  %vm578_vm15 = vcmp.eq.s32.totalorder %v556_v60, %v1429_v41  ;;  %v779_v38 = vadd.f32 (!%p1241_p4), %v1511_v5, %v1527_v26 }
 0x157   :  { %v1624_v44 = vsel %vm568_vm2, %v1481_v18, %v744_v39  ;;  %v720_v45 = vsub.f32 1.0, %v704_v40  ;;  %v690_v18 = vand.u32 2147483648, %v1598_v0 }
 0x158   :  { %v1143_v46 = vpop.eup %1142 }
 0x159   :  { %v1145_v48 = vpop.eup %1144  ;;  %v736_v53 = vmax.f32 %v720_v45, 0.0  ;;  %v630_v54 = vmul.f32 %v1143_v46, %v1596_v35 }
 0x15a   :  { %v1147_v63 = vpop.eup %1146  ;;  %v686_v12 = vmul.f32 %v1145_v48, %v1598_v0 }
 0x15b   :  { %v752_v2 = vmul.f32 %v736_v53, %v736_v53  ;;  %v632_v3 = vsel %vm631_vm4, %v1596_v35, %v630_v54  ;;  %v623_v29 = vmul.f32 %v1147_v63, %v1605_v10  ;;  %v1149_v22 = vpop.eup %1148 }
 0x15c   :  { %v635_v4 = vsel %vm633_vm5, %v634_v55, %v632_v3  ;;  %v688_v23 = vsel %vm687_vm6, %v1598_v0, %v686_v12  ;;  %v679_v21 = vmul.f32 %v1149_v22, %v1611_v50 }
 0x15d   :  { %v1644_v9 = vsel %vm576_vm3, %v1485_v33, %v752_v2  ;;  %v699_v13 = vadd.f32 1e-09, %v635_v4  ;;  %v691_v42 = vsel %vm689_vm7, %v690_v18, %v688_v23  ;;  %v625_v15 = vsel %vm624_vm8, %v1605_v10, %v623_v29  ;;  %v778_v4 = vld [vmem:[#allocation5] sm:$0x1] (!%p1241_p4) }
 0x15e   :  { %v707_v16 = vadd.f32 1e-09, %v691_v42  ;;  %v628_v17 = vsel %vm626_vm9, %v627_v8, %v625_v15  ;;  %v681_v25 = vsel %vm680_vm10, %v1611_v50, %v679_v21 }
 0x15f   :  { %v715_v24 = vsub.f32 1.0, %v699_v13  ;;  %v698_v58 = vadd.f32 1e-09, %v628_v17  ;;  %v684_v30 = vsel %vm682_vm11, %v683_v61, %v681_v25 }
 0x160   :  { %v723_v20 = vsub.f32 1.0, %v707_v16  ;;  %v706_v59 = vadd.f32 1e-09, %v684_v30 }
 0x161   :  { %v731_v33 = vmax.f32 %v715_v24, 0.0  ;;  %v714_v28 = vsub.f32 1.0, %v698_v58 }
 0x162   :  { %v739_v31 = vmax.f32 %v723_v20, 0.0  ;;  %v722_v56 = vsub.f32 1.0, %v706_v59  ;;  %777 = sbr.rel (%p1241_p4) target bundleno = 400 (0x190), region = 33 }
 0x163   :  { %v747_v11 = vmul.f32 %v731_v33, %v731_v33  ;;  %v730_v36 = vmax.f32 %v714_v28, 0.0 }
 0x164   :  { %v755_v27 = vmul.f32 %v739_v31, %v739_v31  ;;  %v738_v7 = vmax.f32 %v722_v56, 0.0 }
 0x165   :  { %v1656_v6 = vsel %vm571_vm12, %v1596_v35, %v747_v11  ;;  %v746_v37 = vmul.f32 %v730_v36, %v730_v36  ;;  %v780_v35 = vadd.f32 (!%p1241_p4), %v779_v38, %v1574_v62 }
 0x166   :  { %v1661_v57 = vsel %vm579_vm13, %v1598_v0, %v755_v27  ;;  %v754_v32 = vmul.f32 %v738_v7, %v738_v7 }
 0x167   :  { %v1664_v39 = vsel %vm570_vm14, %v1605_v10, %v746_v37  ;;  %v781_v0 = vadd.f32 (!%p1241_p4), %v780_v35, %v1556_v14 }
 0x168   :  { %v1668_v40 = vsel %vm578_vm15, %v1611_v50, %v754_v32 }
 0x169   :  { %v782_v43 = vadd.f32 %v781_v0, %v1624_v44 }
 0x16b   :  { %v783_v10 = vadd.f32 %v782_v43, %v1590_v19 }
 0x16d   :  { %v784_v45 = vadd.f32 %v783_v10, %v1664_v39 }
 0x16f   :  { %v785_v41 = vadd.f32 %v784_v45, %v1656_v6 }
 0x171   :  { %v786_v50 = vadd.f32 %v785_v41, %v1535_v52 }
 0x173   :  { %v787_v46 = vadd.f32 %v786_v50, %v1518_v49 }
 0x175   :  { %v788_v48 = vadd.f32 %v787_v46, %v1582_v51 }
 0x177   :  { %v789_v53 = vadd.f32 %v788_v48, %v1565_v47 }
 0x179   :  { %v790_v54 = vadd.f32 %v789_v53, %v1644_v9 }
 0x17b   :  { %v791_v55 = vadd.f32 %v790_v54, %v1608_v1 }
 0x17d   :  { %v792_v63 = vadd.f32 %v791_v55, %v1668_v40 }
 0x17f   :  { %v793_v12 = vadd.f32 %v792_v63, %v1661_v57 }
 0x181   :  { %v794_v18 = vrot.slane %v793_v12, 4 }
 0x183   :  { %v795_v2 = vadd.f32 %v794_v18, %v793_v12 }
 0x185   :  { %v796_v3 = vrot.slane %v795_v2, 2 }
 0x187   :  { %v797_v29 = vadd.f32 %v796_v3, %v795_v2 }
 0x189   :  { %v798_v22 = vrot.slane %v797_v29, 1 }
 0x18b   :  { %v799_v23 = vadd.f32 %v798_v22, %v797_v29 }
 0x18d   :  { %v800_v8 = vadd.f32 %v799_v23, %v778_v4 }
 0x18f   :  { %801 = vst [vmem:[#allocation5] sm:$0x1] %v800_v8 }
 0x190 PF:  { %p802_p5 = scmp.eq.s32.totalorder %s1866_s0, %s1867_s1  ;;  %p803_p6 = scmp.eq.s32.totalorder %s1867_s1, 0 }
 0x192   :  { %p804_p7 = por %p803_p6, %p802_p5 }
 0x193   :  { %v809_v13 = vlaneseq (%p804_p7)  ;;  %s975_s25 = sshll.u32 (%p804_p7), %s1866_s0, 7  ;;  %s976_s27 = sshll.u32 (%p804_p7), %s1867_s1, 7 }
 0x194   :  { %807 = sbr.rel (!%p804_p7) target bundleno = 459 (0x1cb), region = 37  ;;  %v1706_v17 = vstv (%p804_p7), %s975_s25  ;;  %v846_v21 = vstv (%p804_p7), %s976_s27 }
 0x195   :  { %v1697_v42 = vshrl.u32 (%p804_p7), %v809_v13, 7  ;;  %v845_v15 = vand.u32 (%p804_p7), 127, %v809_v13 }
 0x197   :  { %v811_v16 = vadd.s32 (%p804_p7), 8, %v1697_v42  ;;  %v812_v24 = vadd.s32 (%p804_p7), 16, %v1697_v42  ;;  %v813_v58 = vadd.s32 (%p804_p7), 24, %v1697_v42  ;;  %v814_v61 = vadd.s32 (%p804_p7), 32, %v1697_v42 }
 0x198   :  { %v827_v20 = vadd.s32 (%p804_p7), %v1706_v17, %v1697_v42  ;;  %v1713_v25 = vadd.s32 (%p804_p7), %v846_v21, %v845_v15  ;;  %v815_v33 = vadd.s32 (%p804_p7), 40, %v1697_v42  ;;  %v816_v34 = vadd.s32 (%p804_p7), 48, %v1697_v42 }
 0x199   :  { %v828_v28 = vadd.s32 (%p804_p7), %v1706_v17, %v811_v16  ;;  %v829_v30 = vadd.s32 (%p804_p7), %v1706_v17, %v812_v24  ;;  %v830_v31 = vadd.s32 (%p804_p7), %v1706_v17, %v813_v58  ;;  %v831_v59 = vadd.s32 (%p804_p7), %v1706_v17, %v814_v61 }
 0x19a   :  { %vm848_vm0 = vcmp.lt.s32.totalorder (%p804_p7), %v827_v20, %v1713_v25  ;;  %v817_v11 = vadd.s32 (%p804_p7), 56, %v1697_v42  ;;  %v832_v36 = vadd.s32 (%p804_p7), %v1706_v17, %v815_v33  ;;  %vm864_vm3 = vcmp.lt.s32.totalorder (%p804_p7), %v1713_v25, 16 }
 0x19b   :  { %vm849_vm1 = vcmp.lt.s32.totalorder %v828_v28, %v1713_v25  ;;  %vm850_vm2 = vcmp.lt.s32.totalorder %v829_v30, %v1713_v25  ;;  %v818_v27 = vadd.s32 64, %v1697_v42  ;;  %v833_v56 = vadd.s32 %v1706_v17, %v816_v34  ;;  %vm865_vm5 = vmand %vm848_vm0, %vm864_vm3 }
 0x19c   :  { %vm851_vm4 = vcmp.lt.s32.totalorder %v830_v31, %v1713_v25  ;;  %vm852_vm6 = vcmp.lt.s32.totalorder %v831_v59, %v1713_v25  ;;  %vm866_vm7 = vmand %vm849_vm1, %vm864_vm3  ;;  %v882_v37 = vsel %vm865_vm5, %v1527_v26, 0.0  ;;  %v819_v60 = vadd.s32 72, %v1697_v42 }
 0x19d   :  { %v834_v7 = vadd.s32 %v1706_v17, %v817_v11  ;;  %vm853_vm8 = vcmp.lt.s32.totalorder %v832_v36, %v1713_v25  ;;  %vm867_vm9 = vmand %vm850_vm2, %vm864_vm3  ;;  %v883_v32 = vsel %vm866_vm7, %v1511_v5, 0.0  ;;  %v820_v0 = vadd.s32 80, %v1697_v42 }
 0x19e   :  { %vm1744_vm10 = vmand %vm851_vm4, %vm864_vm3  ;;  %v884_v35 = vsel %vm867_vm9, %v1574_v62, 0.0  ;;  %v898_v26 = vadd.f32 %v883_v32, %v882_v37  ;;  %v835_v43 = vadd.s32 %v1706_v17, %v818_v27  ;;  %vm854_vm11 = vcmp.lt.s32.totalorder %v833_v56, %v1713_v25  ;;  %v881_v37 = vld [vmem:[#allocation5] sm:$0x1] }
 0x19f   :  { %vm1754_vm12 = vmand %vm852_vm6, %vm864_vm3  ;;  %v885_v5 = vsel %vm1744_vm10, %v1556_v14, 0.0  ;;  %v821_v41 = vadd.s32 88, %v1697_v42  ;;  %v836_v50 = vadd.s32 %v1706_v17, %v819_v60  ;;  %vm855_vm14 = vcmp.lt.s32.totalorder %v834_v7, %v1713_v25 }
 0x1a0   :  { %vm1763_vm13 = vmand %vm853_vm8, %vm864_vm3  ;;  %v899_v45 = vadd.f32 %v898_v26, %v884_v35  ;;  %v886_v46 = vsel %vm1754_vm12, %v1624_v44, 0.0  ;;  %v822_v53 = vadd.s32 96, %v1697_v42  ;;  %v837_v54 = vadd.s32 %v1706_v17, %v820_v0 }
 0x1a1   :  { %vm1775_vm15 = vmand %vm854_vm11, %vm864_vm3  ;;  %vm856_vm0 = vcmp.lt.s32.totalorder %v835_v43, %v1713_v25  ;;  %v887_v55 = vsel %vm1763_vm13, %v1590_v19, 0.0  ;;  %v823_v12 = vadd.s32 104, %v1697_v42  ;;  %v838_v18 = vadd.s32 %v1706_v17, %v821_v41 }
 0x1a2   :  { %v900_v48 = vadd.f32 %v899_v45, %v885_v5  ;;  %vm1787_vm1 = vmand %vm855_vm14, %vm864_vm3  ;;  %vm857_vm2 = vcmp.lt.s32.totalorder %v836_v50, %v1713_v25  ;;  %v888_v2 = vsel %vm1775_vm15, %v1664_v39, 0.0  ;;  %v824_v29 = vadd.s32 112, %v1697_v42 }
 0x1a3   :  { %vm1799_vm4 = vmand %vm856_vm0, %vm864_vm3  ;;  %v839_v22 = vadd.s32 %v1706_v17, %v822_v53  ;;  %vm858_vm5 = vcmp.lt.s32.totalorder %v837_v54, %v1713_v25  ;;  %v889_v4 = vsel %vm1787_vm1, %v1656_v6, 0.0  ;;  %v825_v8 = vadd.s32 120, %v1697_v42 }
 0x1a4   :  { %v901_v63 = vadd.f32 %v900_v48, %v886_v46  ;;  %vm1811_vm6 = vmand %vm857_vm2, %vm864_vm3  ;;  %v840_v13 = vadd.s32 %v1706_v17, %v823_v12  ;;  %vm859_vm7 = vcmp.lt.s32.totalorder %v838_v18, %v1713_v25  ;;  %v890_v15 = vsel %vm1799_vm4, %v1535_v52, 0.0 }
 0x1a5   :  { %vm1823_vm8 = vmand %vm858_vm5, %vm864_vm3  ;;  %v841_v21 = vadd.s32 %v1706_v17, %v824_v29  ;;  %vm860_vm9 = vcmp.lt.s32.totalorder %v839_v22, %v1713_v25  ;;  %v891_v42 = vsel %vm1811_vm6, %v1518_v49, 0.0  ;;  %v842_v52 = vadd.s32 %v1706_v17, %v825_v8 }
 0x1a6   :  { %v902_v3 = vadd.f32 %v901_v63, %v887_v55  ;;  %vm876_vm10 = vmand %vm859_vm7, %vm864_vm3  ;;  %vm861_vm11 = vcmp.lt.s32.totalorder %v840_v13, %v1713_v25  ;;  %v892_v58 = vsel %vm1823_vm8, %v1582_v51, 0.0 }
 0x1a7   :  { %vm877_vm12 = vmand %vm860_vm9, %vm864_vm3  ;;  %vm862_vm13 = vcmp.lt.s32.totalorder %v841_v21, %v1713_v25  ;;  %v893_v49 = vsel %vm876_vm10, %v1565_v47, 0.0  ;;  %vm863_vm15 = vcmp.lt.s32.totalorder %v842_v52, %v1713_v25 }
 0x1a8   :  { %v903_v23 = vadd.f32 %v902_v3, %v888_v2  ;;  %vm878_vm14 = vmand %vm861_vm11, %vm864_vm3  ;;  %v894_v17 = vsel %vm877_vm12, %v1644_v9, 0.0 }
 0x1a9   :  { %vm879_vm0 = vmand %vm862_vm13, %vm864_vm3  ;;  %v895_v33 = vsel %vm878_vm14, %v1608_v1, 0.0 }
 0x1aa   :  { %v904_v16 = vadd.f32 %v903_v23, %v889_v4  ;;  %vm880_vm1 = vmand %vm863_vm15, %vm864_vm3  ;;  %v896_v47 = vsel %vm879_vm0, %v1668_v40, 0.0 }
 0x1ab   :  { %v897_v34 = vsel %vm880_vm1, %v1661_v57, 0.0 }
 0x1ac   :  { %v905_v24 = vadd.f32 %v904_v16, %v890_v15 }
 0x1ae   :  { %v906_v61 = vadd.f32 %v905_v24, %v891_v42 }
 0x1b0   :  { %v907_v20 = vadd.f32 %v906_v61, %v892_v58 }
 0x1b2   :  { %v908_v51 = vadd.f32 %v907_v20, %v893_v49 }
 0x1b4   :  { %v909_v28 = vadd.f32 %v908_v51, %v894_v17 }
 0x1b6   :  { %v910_v30 = vadd.f32 %v909_v28, %v895_v33 }
 0x1b8   :  { %v911_v31 = vadd.f32 %v910_v30, %v896_v47 }
 0x1ba   :  { %v912_v59 = vadd.f32 %v911_v31, %v897_v34 }
 0x1bc   :  { %v913_v11 = vrot.slane %v912_v59, 4 }
 0x1be   :  { %v914_v36 = vadd.f32 %v913_v11, %v912_v59 }
 0x1c0   :  { %v915_v9 = vrot.slane %v914_v36, 2 }
 0x1c2   :  { %v916_v27 = vadd.f32 %v915_v9, %v914_v36 }
 0x1c4   :  { %v917_v56 = vrot.slane %v916_v27, 1 }
 0x1c6   :  { %v918_v60 = vadd.f32 %v917_v56, %v916_v27 }
 0x1c8   :  { %v919_v7 = vadd.f32 %v918_v60, %v881_v37 }
 0x1ca   :  { %920 = vst [vmem:[#allocation5] sm:$0x1] %v919_v7 }
 0x1cb PF:  { %s1176_s0 = smov [#allocation5]  }
 0x1cc   :  { %s927_s1 = sshll.u32 %s1176_s0, 4  ;;  %s928_s1 = int_to_ptr.vmem [resolvable:$true] %s927_s1 }
 0x1cd   :  { %s1150_s28 = scalar_lea.vmem %s928_s1, 16  ;;  %s1154_s29 = scalar_lea.vmem %s928_s1, 32 }
 0x1ce   :  { %p1151_p8 = scmp.ne.s32.totalorder %s928_s1, %s1150_s28  ;;  %p1155_p9 = scmp.lt.s32.totalorder %s928_s1, %s928_s1 }
 0x1cf   :  { %p1156_p10 = scmp.lt.s32.totalorder %s1154_s29, %s1150_s28 }
 0x1d1   :  { %p1157_p11 = por %p1156_p10, %p1155_p9 }
 0x1d3   :  { %p1158_p12 = pnand %p1157_p11, %p1151_p8 }
 0x1d5   :  { %1161 = shalt.err (!%p1158_p12)
}
 0x1d6   :  { %s1162_s30 = scalar_lea.hbm %s1874_s8, 16 }
 0x1d7   :  { %p1163_p13 = scmp.ne.s32.totalorder %s1874_s8, %s1162_s30  ;;  %p1166_p0 = scmp.lt.u32.totalorder %s1162_s30, %s1874_s8 }
 0x1d9   :  { %p1168_p1 = pnand %p1166_p0, %p1163_p13 }
 0x1db   :  { %1171 = shalt.err (!%p1168_p1)
}
 0x1dc   :  { %930 = dma.vmem_to_hbm [thread:$0]  %s928_s1, 16, %s1874_s8, [#allocation6]  }
 0x1dd   :  { %1172 = dma.done.wait [#allocation6], 16  }
 0x1de   :  { %1173 = vsyncadd [#allocation6], 4294967280 }
 0x1df   :  { %934 = vsyncpa [#allocation6], 1 }

</bundles_post_ra>
